<compile_context>
chip_gen: v7x
topology: tpu7x:2x2x1
jax: 0.10.0
libtpu: 0.0.40
codegen_flags: <defaults>
</compile_context>

<pallas_src>
import jax
import jax.numpy as jnp
from jax import lax
from jax.experimental import pallas as pl
from jax.experimental.pallas import tpu as pltpu


def _cdiv(a, b):
    return (a + b - 1) // b


def _round_up(x, m):
    return ((x + m - 1) // m) * m


def _pick_tile(batch, tile_b):
    """Batch-tile size: multiple of 16 (8 for tiny batches), >=2 tiles on big batches
    (v7x megacore), shrunk to minimize tail padding.  Returns (tile_b, num_tiles)."""
    gran = 16 if batch >= 16 else 8
    tile_b = max(gran, (int(tile_b) // gran) * gran)      # clamp user value to granule
    cap = _round_up(batch, gran)
    if cap >= 256:                                        # >= 2 tiles -> both v7x TCs busy
        cap = _round_up(_cdiv(cap, 2), gran)
    tile_b = min(tile_b, cap)
    num_tiles = _cdiv(batch, tile_b)
    tile_b = _round_up(_cdiv(batch, num_tiles), gran)     # same #tiles, minimal padding
    return tile_b, num_tiles


def critic_kernel(s_ref, a_ref,
                  w1s_ref, w1a_ref, b1_ref,
                  w2_ref, b2_ref,
                  w3_ref, b3_ref,
                  wqt_ref, bq_ref,
                  q_ref):
    """One batch tile of the critic MLP.  bf16 MXU inputs, f32 accumulation."""
    cdt = w2_ref.dtype  # compute dtype (bfloat16)

    # Layer 1: split matmul == concat([state, action]) @ W1  (no in-kernel concat).
    h = (jnp.dot(s_ref[...].astype(cdt), w1s_ref[...],
                 preferred_element_type=jnp.float32)
         + jnp.dot(a_ref[...].astype(cdt), w1a_ref[...],
                   preferred_element_type=jnp.float32)
         + b1_ref[...])
    h = jnp.maximum(h, 0.0)

    h = jnp.dot(h.astype(cdt), w2_ref[...],
                preferred_element_type=jnp.float32) + b2_ref[...]
    h = jnp.maximum(h, 0.0)

    h = jnp.dot(h.astype(cdt), w3_ref[...],
                preferred_element_type=jnp.float32) + b3_ref[...]
    h = jnp.maximum(h, 0.0)

    # q head computed transposed so the only output store is lane-dense along batch:
    # (8, H) f32 contracted with (tile_b, H) f32 over H -> (8, tile_b).  Row 0 is real.
    q = lax.dot_general(wqt_ref[...], h,
                        dimension_numbers=(((1,), (1,)), ((), ())),
                        preferred_element_type=jnp.float32)
    q_ref[...] = q + bq_ref[0, 0]


def critic_forward(state, action, params, *, tile_b=1024,
                   compute_dtype=jnp.bfloat16):
    """state: [B, Ds], action: [B, Da] (f32).  Returns q: [B, 1] (f32)."""
    B, Ds = state.shape
    Ba, Da = action.shape
    assert B == Ba, (B, Ba)
    H = params["w2"].shape[0]

    tile_b, num_tiles = _pick_tile(B, tile_b)
    Bp = num_tiles * tile_b

    # Parameters in kernel layout (weights bf16 for the MXU, biases f32 post-accum,
    # q head kept f32; wq^T padded to 8 sublanes, row 0 real).
    w1 = params["w1"]
    w1s = w1[:Ds].astype(compute_dtype)
    w1a = w1[Ds:Ds + Da].astype(compute_dtype)
    w2 = params["w2"].astype(compute_dtype)
    w3 = params["w3"].astype(compute_dtype)
    b1 = params["b1"].astype(jnp.float32).reshape(1, H)
    b2 = params["b2"].astype(jnp.float32).reshape(1, H)
    b3 = params["b3"].astype(jnp.float32).reshape(1, H)
    wqt = jnp.zeros((8, H), jnp.float32).at[0].set(
        params["wq"].astype(jnp.float32)[:, 0])
    bq = params["bq"].astype(jnp.float32).reshape(1, 1)

    # Pad the batch only if needed (inputs stay in caller dtype; cast happens on-chip).
    if Bp != B:
        state = jnp.pad(state, ((0, Bp - B), (0, 0)))
        action = jnp.pad(action, ((0, Bp - B), (0, 0)))

    rep = lambda i: (0, 0)  # weights/biases: same block every step -> VMEM resident
    in_specs = [
        pl.BlockSpec((tile_b, Ds), lambda i: (i, 0)),          # state
        pl.BlockSpec((tile_b, Da), lambda i: (i, 0)),          # action
        pl.BlockSpec((Ds, H), rep),                            # w1_state
        pl.BlockSpec((Da, H), rep),                            # w1_action
        pl.BlockSpec((1, H), rep),                             # b1
        pl.BlockSpec((H, H), rep),                             # w2
        pl.BlockSpec((1, H), rep),                             # b2
        pl.BlockSpec((H, H), rep),                             # w3
        pl.BlockSpec((1, H), rep),                             # b3
        pl.BlockSpec((8, H), rep),                             # wq^T (padded to 8 rows)
        pl.BlockSpec(memory_space=pltpu.MemorySpace.SMEM),     # bq scalar
    ]
    # Per-tile output: lane-dense (8, tile_b) f32 slab; leading dim squeezed in-kernel.
    out_specs = pl.BlockSpec((None, 8, tile_b), lambda i: (i, 0, 0))

    itemsize = jnp.dtype(state.dtype).itemsize
    cdt_size = jnp.dtype(compute_dtype).itemsize
    flops = 2 * Bp * (Ds * H + Da * H + 2 * H * H + 8 * H)
    bytes_accessed = (Bp * (Ds + Da) * itemsize                # inputs
                      + ((Ds + Da) * H + 2 * H * H) * cdt_size  # bf16 weights
                      + (3 * H + 8 * H + 1) * 4                 # f32 biases + wq^T
                      + num_tiles * 8 * tile_b * 4)             # output slabs
    cost = pl.CostEstimate(flops=flops, transcendentals=0,
                           bytes_accessed=int(bytes_accessed))

    q_slab = pl.pallas_call(
        critic_kernel,
        out_shape=jax.ShapeDtypeStruct((num_tiles, 8, tile_b), jnp.float32),
        grid=(num_tiles,),
        in_specs=in_specs,
        out_specs=out_specs,
        compiler_params=pltpu.CompilerParams(
            dimension_semantics=("parallel",),   # megacore sharding on v7x
        ),
        cost_estimate=cost,
    )(state, action, w1s, w1a, b1, w2, b2, w3, b3, wqt, bq)

    # Row 0 of each slab holds q for that batch tile.
    q = q_slab[:, 0, :].reshape(num_tiles * tile_b)[:B].reshape(B, 1)
    return q


def init_params(key, state_dim, action_dim, hidden_dim=256):
    """Mirrors CriticNetwork.__init__ shapes; Linear weights stored (in, out)."""
    input_dim = state_dim + action_dim
    keys = jax.random.split(key, 8)

    def lin(kw, kb, fan_in, fan_out):
        bound = 1.0 / jnp.sqrt(fan_in)
        w = jax.random.uniform(kw, (fan_in, fan_out), jnp.float32, -bound, bound)
        b = jax.random.uniform(kb, (1, fan_out), jnp.float32, -bound, bound)
        return w, b

    w1, b1 = lin(keys[0], keys[1], input_dim, hidden_dim)
    w2, b2 = lin(keys[2], keys[3], hidden_dim, hidden_dim)
    w3, b3 = lin(keys[4], keys[5], hidden_dim, hidden_dim)
    wq, bq = lin(keys[6], keys[7], hidden_dim, 1)
    return {"w1": w1, "b1": b1, "w2": w2, "b2": b2,
            "w3": w3, "b3": b3, "wq": wq, "bq": bq}


def reference_forward(state, action, params, compute_dtype=jnp.bfloat16):
    """Pure-JAX reference matching the kernel's bf16-hidden / f32-head math."""
    x = jnp.concatenate([state, action], axis=-1)

    def lin(h, w, b):
        return (jnp.dot(h.astype(compute_dtype), w.astype(compute_dtype),
                        preferred_element_type=jnp.float32)
                + b.astype(jnp.float32))

    h = jnp.maximum(lin(x, params["w1"], params["b1"]), 0.0)
    h = jnp.maximum(lin(h, params["w2"], params["b2"]), 0.0)
    h = jnp.maximum(lin(h, params["w3"], params["b3"]), 0.0)
    return (jnp.dot(h, params["wq"].astype(jnp.float32),
                    preferred_element_type=jnp.float32)
            + params["bq"].astype(jnp.float32))


if __name__ == "__main__":
    batch, state_dim, action_dim, hidden_dim = 8, 12, 4, 256

    key = jax.random.PRNGKey(0)
    ks, ka, kp = jax.random.split(key, 3)
    state = jax.random.normal(ks, (batch, state_dim), dtype=jnp.float32)
    action = jax.random.normal(ka, (batch, action_dim), dtype=jnp.float32)
    params = init_params(kp, state_dim, action_dim, hidden_dim)

    q = critic_forward(state, action, params)
    jax.block_until_ready(q)

    q_ref = reference_forward(state, action, params)
    assert q.shape == (batch, 1), q.shape
    err = float(jnp.max(jnp.abs(q - q_ref)))
    assert err < 2e-2, err

    print("KERNEL_OK")
</pallas_src>

<mosaic_0001>
module attributes {stable_mosaic.version = 11 : i64} {
  func.func @critic_kernel(%arg0: i32, %arg1: memref<8x12xf32, #tpu.memory_space<vmem>>, %arg2: memref<8x4xf32, #tpu.memory_space<vmem>>, %arg3: memref<12x256xbf16, #tpu.memory_space<vmem>>, %arg4: memref<4x256xbf16, #tpu.memory_space<vmem>>, %arg5: memref<1x256xf32, #tpu.memory_space<vmem>>, %arg6: memref<256x256xbf16, #tpu.memory_space<vmem>>, %arg7: memref<1x256xf32, #tpu.memory_space<vmem>>, %arg8: memref<256x256xbf16, #tpu.memory_space<vmem>>, %arg9: memref<1x256xf32, #tpu.memory_space<vmem>>, %arg10: memref<8x256xf32, #tpu.memory_space<vmem>>, %arg11: memref<1x1xf32, #tpu.memory_space<smem>>, %arg12: memref<1x8x8xf32, #tpu.memory_space<vmem>>) attributes {dimension_semantics = [#tpu.dimension_semantics<parallel>], iteration_bounds = array<i64: 1>, scalar_prefetch = 0 : i64, scratch_operands = 0 : i64, tpu.core_type = #tpu.core_type<tc>, window_params = [{transform_indices = @transform_0, window_bounds = array<i64: 8, 12>}, {transform_indices = @transform_1, window_bounds = array<i64: 8, 4>}, {pipeline_mode = #tpu.pipeline_mode<synchronous>, transform_indices = @transform_2, window_bounds = array<i64: 12, 256>}, {pipeline_mode = #tpu.pipeline_mode<synchronous>, transform_indices = @transform_3, window_bounds = array<i64: 4, 256>}, {pipeline_mode = #tpu.pipeline_mode<synchronous>, transform_indices = @transform_4, window_bounds = array<i64: 1, 256>}, {pipeline_mode = #tpu.pipeline_mode<synchronous>, transform_indices = @transform_5, window_bounds = array<i64: 256, 256>}, {pipeline_mode = #tpu.pipeline_mode<synchronous>, transform_indices = @transform_6, window_bounds = array<i64: 1, 256>}, {pipeline_mode = #tpu.pipeline_mode<synchronous>, transform_indices = @transform_7, window_bounds = array<i64: 256, 256>}, {pipeline_mode = #tpu.pipeline_mode<synchronous>, transform_indices = @transform_8, window_bounds = array<i64: 1, 256>}, {pipeline_mode = #tpu.pipeline_mode<synchronous>, transform_indices = @transform_9, window_bounds = array<i64: 8, 256>}, {transform_indices = @transform_10, window_bounds = array<i64: 1, 1>}, {transform_indices = @transform_11, window_bounds = array<i64: 1, 8, 8>}]} {
    %c0 = arith.constant 0 : index
    %c0_0 = arith.constant 0 : index
    %0 = vector.load %arg1[%c0, %c0_0] : memref<8x12xf32, #tpu.memory_space<vmem>>, vector<8x12xf32>
    %1 = arith.truncf %0 : vector<8x12xf32> to vector<8x12xbf16>
    %c0_1 = arith.constant 0 : index
    %c0_2 = arith.constant 0 : index
    %2 = vector.load %arg3[%c0_1, %c0_2] : memref<12x256xbf16, #tpu.memory_space<vmem>>, vector<12x256xbf16>
    %cst = arith.constant dense<0.000000e+00> : vector<8x256xf32>
    %3 = tpu.matmul %1, %2, %cst {dimension_numbers = #tpu.dot_dimension_numbers<[1], [0], [0], [1], [0, 0, 1, 1], [], []>} : vector<8x12xbf16>, vector<12x256xbf16>, vector<8x256xf32> -> vector<8x256xf32>
    %c0_3 = arith.constant 0 : index
    %c0_4 = arith.constant 0 : index
    %4 = vector.load %arg2[%c0_3, %c0_4] : memref<8x4xf32, #tpu.memory_space<vmem>>, vector<8x4xf32>
    %5 = arith.truncf %4 : vector<8x4xf32> to vector<8x4xbf16>
    %c0_5 = arith.constant 0 : index
    %c0_6 = arith.constant 0 : index
    %6 = vector.load %arg4[%c0_5, %c0_6] : memref<4x256xbf16, #tpu.memory_space<vmem>>, vector<4x256xbf16>
    %cst_7 = arith.constant dense<0.000000e+00> : vector<8x256xf32>
    %7 = tpu.matmul %5, %6, %cst_7 {dimension_numbers = #tpu.dot_dimension_numbers<[1], [0], [0], [1], [0, 0, 1, 1], [], []>} : vector<8x4xbf16>, vector<4x256xbf16>, vector<8x256xf32> -> vector<8x256xf32>
    %8 = arith.addf %3, %7 : vector<8x256xf32>
    %c0_8 = arith.constant 0 : index
    %c0_9 = arith.constant 0 : index
    %9 = vector.load %arg5[%c0_8, %c0_9] : memref<1x256xf32, #tpu.memory_space<vmem>>, vector<1x256xf32>
    %10 = vector.broadcast %9 : vector<1x256xf32> to vector<8x256xf32>
    %11 = arith.addf %8, %10 : vector<8x256xf32>
    %cst_10 = arith.constant 0.000000e+00 : f32
    %12 = vector.broadcast %cst_10 : f32 to vector<8x256xf32>
    %13 = arith.maximumf %11, %12 : vector<8x256xf32>
    %14 = arith.truncf %13 : vector<8x256xf32> to vector<8x256xbf16>
    %c0_11 = arith.constant 0 : index
    %c0_12 = arith.constant 0 : index
    %15 = vector.load %arg6[%c0_11, %c0_12] : memref<256x256xbf16, #tpu.memory_space<vmem>>, vector<256x256xbf16>
    %cst_13 = arith.constant dense<0.000000e+00> : vector<8x256xf32>
    %16 = tpu.matmul %14, %15, %cst_13 {dimension_numbers = #tpu.dot_dimension_numbers<[1], [0], [0], [1], [0, 0, 1, 1], [], []>} : vector<8x256xbf16>, vector<256x256xbf16>, vector<8x256xf32> -> vector<8x256xf32>
    %c0_14 = arith.constant 0 : index
    %c0_15 = arith.constant 0 : index
    %17 = vector.load %arg7[%c0_14, %c0_15] : memref<1x256xf32, #tpu.memory_space<vmem>>, vector<1x256xf32>
    %18 = vector.broadcast %17 : vector<1x256xf32> to vector<8x256xf32>
    %19 = arith.addf %16, %18 : vector<8x256xf32>
    %cst_16 = arith.constant 0.000000e+00 : f32
    %20 = vector.broadcast %cst_16 : f32 to vector<8x256xf32>
    %21 = arith.maximumf %19, %20 : vector<8x256xf32>
    %22 = arith.truncf %21 : vector<8x256xf32> to vector<8x256xbf16>
    %c0_17 = arith.constant 0 : index
    %c0_18 = arith.constant 0 : index
    %23 = vector.load %arg8[%c0_17, %c0_18] : memref<256x256xbf16, #tpu.memory_space<vmem>>, vector<256x256xbf16>
    %cst_19 = arith.constant dense<0.000000e+00> : vector<8x256xf32>
    %24 = tpu.matmul %22, %23, %cst_19 {dimension_numbers = #tpu.dot_dimension_numbers<[1], [0], [0], [1], [0, 0, 1, 1], [], []>} : vector<8x256xbf16>, vector<256x256xbf16>, vector<8x256xf32> -> vector<8x256xf32>
    %c0_20 = arith.constant 0 : index
    %c0_21 = arith.constant 0 : index
    %25 = vector.load %arg9[%c0_20, %c0_21] : memref<1x256xf32, #tpu.memory_space<vmem>>, vector<1x256xf32>
    %26 = vector.broadcast %25 : vector<1x256xf32> to vector<8x256xf32>
    %27 = arith.addf %24, %26 : vector<8x256xf32>
    %cst_22 = arith.constant 0.000000e+00 : f32
    %28 = vector.broadcast %cst_22 : f32 to vector<8x256xf32>
    %29 = arith.maximumf %27, %28 : vector<8x256xf32>
    %c0_23 = arith.constant 0 : index
    %c0_24 = arith.constant 0 : index
    %30 = vector.load %arg10[%c0_23, %c0_24] : memref<8x256xf32, #tpu.memory_space<vmem>>, vector<8x256xf32>
    %cst_25 = arith.constant dense<0.000000e+00> : vector<8x8xf32>
    %31 = tpu.matmul %30, %29, %cst_25 {dimension_numbers = #tpu.dot_dimension_numbers<[1], [1], [0], [0], [0, 0, 1, 0], [], []>} : vector<8x256xf32>, vector<8x256xf32>, vector<8x8xf32> -> vector<8x8xf32>
    %c0_26 = arith.constant 0 : index
    %c0_27 = arith.constant 0 : index
    %32 = memref.load %arg11[%c0_26, %c0_27] : memref<1x1xf32, #tpu.memory_space<smem>>
    %33 = vector.broadcast %32 : f32 to vector<8x8xf32>
    %34 = arith.addf %31, %33 : vector<8x8xf32>
    %c0_28 = arith.constant 0 : index
    %c0_29 = arith.constant 0 : index
    %c0_30 = arith.constant 0 : index
    %35 = vector.load %arg12[%c0_28, %c0_29, %c0_30] : memref<1x8x8xf32, #tpu.memory_space<vmem>>, vector<1x8x8xf32>
    %36 = vector.shape_cast %35 : vector<1x8x8xf32> to vector<8x8xf32>
    %37 = vector.shape_cast %34 : vector<8x8xf32> to vector<1x8x8xf32>
    tpu.vector_store %arg12[%c0_28, %c0_29, %c0_30], %37 {strides = array<i32>} : memref<1x8x8xf32, #tpu.memory_space<vmem>>, vector<1x8x8xf32>,
    return
  }
  func.func @transform_0(%arg0: i32) -> (i32, i32) {
    %c0_i32 = arith.constant 0 : i32
    %c0_i32_0 = arith.constant 0 : i32
    return %arg0, %c0_i32 : i32, i32
  }
  func.func @transform_1(%arg0: i32) -> (i32, i32) {
    %c0_i32 = arith.constant 0 : i32
    %c0_i32_0 = arith.constant 0 : i32
    return %arg0, %c0_i32 : i32, i32
  }
  func.func @transform_2(%arg0: i32) -> (i32, i32) {
    %c0_i32 = arith.constant 0 : i32
    %c0_i32_0 = arith.constant 0 : i32
    %c0_i32_1 = arith.constant 0 : i32
    return %c0_i32, %c0_i32_0 : i32, i32
  }
  func.func @transform_3(%arg0: i32) -> (i32, i32) {
    %c0_i32 = arith.constant 0 : i32
    %c0_i32_0 = arith.constant 0 : i32
    %c0_i32_1 = arith.constant 0 : i32
    return %c0_i32, %c0_i32_0 : i32, i32
  }
  func.func @transform_4(%arg0: i32) -> (i32, i32) {
    %c0_i32 = arith.constant 0 : i32
    %c0_i32_0 = arith.constant 0 : i32
    %c0_i32_1 = arith.constant 0 : i32
    return %c0_i32, %c0_i32_0 : i32, i32
  }
  func.func @transform_5(%arg0: i32) -> (i32, i32) {
    %c0_i32 = arith.constant 0 : i32
    %c0_i32_0 = arith.constant 0 : i32
    %c0_i32_1 = arith.constant 0 : i32
    return %c0_i32, %c0_i32_0 : i32, i32
  }
  func.func @transform_6(%arg0: i32) -> (i32, i32) {
    %c0_i32 = arith.constant 0 : i32
    %c0_i32_0 = arith.constant 0 : i32
    %c0_i32_1 = arith.constant 0 : i32
    return %c0_i32, %c0_i32_0 : i32, i32
  }
  func.func @transform_7(%arg0: i32) -> (i32, i32) {
    %c0_i32 = arith.constant 0 : i32
    %c0_i32_0 = arith.constant 0 : i32
    %c0_i32_1 = arith.constant 0 : i32
    return %c0_i32, %c0_i32_0 : i32, i32
  }
  func.func @transform_8(%arg0: i32) -> (i32, i32) {
    %c0_i32 = arith.constant 0 : i32
    %c0_i32_0 = arith.constant 0 : i32
    %c0_i32_1 = arith.constant 0 : i32
    return %c0_i32, %c0_i32_0 : i32, i32
  }
  func.func @transform_9(%arg0: i32) -> (i32, i32) {
    %c0_i32 = arith.constant 0 : i32
    %c0_i32_0 = arith.constant 0 : i32
    %c0_i32_1 = arith.constant 0 : i32
    return %c0_i32, %c0_i32_0 : i32, i32
  }
  func.func @transform_10(%arg0: i32) -> (i32, i32) {
    %c0_i32 = arith.constant 0 : i32
    %c0_i32_0 = arith.constant 0 : i32
    %c0_i32_1 = arith.constant 0 : i32
    return %c0_i32, %c0_i32_0 : i32, i32
  }
  func.func @transform_11(%arg0: i32) -> (i32, i32, i32) {
    %c0_i32 = arith.constant 0 : i32
    %c0_i32_0 = arith.constant 0 : i32
    %c0_i32_1 = arith.constant 0 : i32
    return %arg0, %c0_i32, %c0_i32_0 : i32, i32, i32
  }
}

</mosaic_0001>

<bundles_post_ra>
// kernel: tpu_custom_call.1
= control target key start
LH: loop header
LB: loop body
LE: loop exit
PB: predicated region body
PF: predicated region fallthrough
CT: control target
= control target key end

     0   :  { %17 = vsyncpa [#allocation4], 0  ;;  %s1278_s0 = inlined_call_operand.hbm [shape: f32[8,12], index: 0, kind: input, shape index: {}]   ;;  %s1279_s1 = inlined_call_operand.vmem [shape: f32[8,4], index: 1, kind: input, shape index: {}]   ;;  %s1280_s2 = inlined_call_operand.vmem [shape: bf16[12,256], index: 2, kind: input, shape index: {}]   ;;  %s1281_s3 = inlined_call_operand.hbm [shape: bf16[4,256], index: 3, kind: input, shape index: {}]   ;;  %s1282_s4 = inlined_call_operand.vmem [shape: f32[1,256], index: 4, kind: input, shape index: {}]   ;;  %s1283_s5 = inlined_call_operand.hbm [shape: bf16[256,256], index: 5, kind: input, shape index: {}]   ;;  %s1284_s6 = inlined_call_operand.vmem [shape: f32[1,256], index: 6, kind: input, shape index: {}]   ;;  %s1285_s7 = inlined_call_operand.hbm [shape: bf16[256,256], index: 7, kind: input, shape index: {}]   ;;  %s1286_s8 = inlined_call_operand.vmem [shape: f32[1,256], index: 8, kind: input, shape index: {}]   ;;  %s1287_s9 = inlined_call_operand.vmem [shape: f32[8,256], index: 9, kind: input, shape index: {}]   ;;  %s1288_s10 = inlined_call_operand.<no memory space> [shape: f32[1,1], index: 10, kind: input, shape index: {}]   ;;  %s1289_s11 = inlined_call_operand.hbm [shape: f32[1,8,8], index: 11, kind: output, shape index: {}]  }
   0x1   :  { %18 = vsyncpa [#allocation7], 0 }
   0x2   :  { %19 = vsyncpa [#allocation10], 0 }
   0x3   :  { %20 = vsyncpa [#allocation5], 0  ;;  %s1123_s17 = smov [#allocation6]   ;;  %s1124_s19 = smov [#allocation3]  }
   0x4   :  { %s41_s18 = sshll.u32 %s1123_s17, 4  ;;  %s27_s20 = sshll.u32 %s1124_s19, 4  ;;  %s42_s18 = int_to_ptr.vmem [resolvable:$true] %s41_s18  ;;  %s28_s20 = int_to_ptr.vmem [resolvable:$true] %s27_s20 }
   0x5   :  { %s1005_s23 = scalar_lea.hbm %s1281_s3, 64 }
   0x6   :  { %p1006_p0 = scmp.ne.s32.totalorder %s1281_s3, %s1005_s23  ;;  %p1009_p1 = scmp.lt.u32.totalorder %s1005_s23, %s1281_s3 }
   0x8   :  { %p1011_p2 = pnand %p1009_p1, %p1006_p0 }
   0xa   :  { %1014 = shalt.err (!%p1011_p2)
}
   0xb   :  { %s1015_s28 = scalar_lea.vmem %s42_s18, 64  ;;  %p1020_p4 = scmp.lt.s32.totalorder %s42_s18, %s42_s18 }
   0xc   :  { %p1016_p3 = scmp.ne.s32.totalorder %s42_s18, %s1015_s28  ;;  %p1021_p5 = scmp.lt.s32.totalorder %s1015_s28, %s1015_s28 }
   0xe   :  { %p1022_p6 = por %p1021_p5, %p1020_p4 }
  0x10   :  { %p1023_p7 = pnand %p1022_p6, %p1016_p3 }
  0x12   :  { %1026 = shalt.err (!%p1023_p7)
}
  0x13   :  { %44 = dma.hbm_to_vmem [thread:$0]  %s1281_s3, 64, %s42_s18, [#allocation7]  }
  0x14   :  { %s1027_s14 = scalar_lea.hbm %s1278_s0, 128 }
  0x15   :  { %p1028_p8 = scmp.ne.s32.totalorder %s1278_s0, %s1027_s14  ;;  %p1031_p9 = scmp.lt.u32.totalorder %s1027_s14, %s1278_s0 }
  0x17   :  { %p1033_p10 = pnand %p1031_p9, %p1028_p8 }
  0x19   :  { %1036 = shalt.err (!%p1033_p10)
}
  0x1a   :  { %s1037_s21 = scalar_lea.vmem %s28_s20, 128  ;;  %p1042_p12 = scmp.lt.s32.totalorder %s28_s20, %s28_s20 }
  0x1b   :  { %p1038_p11 = scmp.ne.s32.totalorder %s28_s20, %s1037_s21  ;;  %p1043_p13 = scmp.lt.s32.totalorder %s1037_s21, %s1037_s21 }
  0x1d   :  { %p1044_p0 = por %p1043_p13, %p1042_p12 }
  0x1f   :  { %p1045_p1 = pnand %p1044_p0, %p1038_p11 }
  0x21   :  { %1048 = shalt.err (!%p1045_p1)
}
  0x22   :  { %30 = dma.hbm_to_vmem [thread:$0]  %s1278_s0, 128, %s28_s20, [#allocation4]  }
  0x23   :  { %s1125_s22 = smov [#allocation8]   ;;  %s1049_s26 = scalar_lea.hbm %s1283_s5, 4096 }
  0x24   :  { %s52_s23 = sshll.u32 %s1125_s22, 4  ;;  %p1050_p2 = scmp.ne.s32.totalorder %s1283_s5, %s1049_s26  ;;  %s53_s23 = int_to_ptr.vmem [resolvable:$true] %s52_s23 }
  0x25   :  { %p1053_p3 = scmp.lt.u32.totalorder %s1049_s26, %s1283_s5 }
  0x27   :  { %p1055_p4 = pnand %p1053_p3, %p1050_p2 }
  0x29   :  { %1058 = shalt.err (!%p1055_p4)
}
  0x2a   :  { %s1059_s12 = scalar_lea.vmem %s53_s23, 4096  ;;  %p1064_p6 = scmp.lt.s32.totalorder %s53_s23, %s53_s23 }
  0x2b   :  { %p1060_p5 = scmp.ne.s32.totalorder %s53_s23, %s1059_s12  ;;  %p1065_p7 = scmp.lt.s32.totalorder %s1059_s12, %s1059_s12 }
  0x2d   :  { %p1066_p8 = por %p1065_p7, %p1064_p6 }
  0x2f   :  { %p1067_p9 = pnand %p1066_p8, %p1060_p5 }
  0x31   :  { %1070 = shalt.err (!%p1067_p9)
}
  0x32   :  { %s1126_s0 = smov 128   ;;  %s1127_s20 = smov 8  }
  0x33   :  { %58 = dma.hbm_to_vmem [thread:$0]  %s1283_s5, 4096, %s53_s23, [#allocation7], %s1126_s0, %s1126_s0, %s1127_s20  }
  0x34   :  { %s1128_s15 = smov [#allocation9]   ;;  %s1071_s21 = scalar_lea.hbm %s1285_s7, 4096 }
  0x35   :  { %s66_s16 = sshll.u32 %s1128_s15, 4  ;;  %p1072_p10 = scmp.ne.s32.totalorder %s1285_s7, %s1071_s21  ;;  %s67_s16 = int_to_ptr.vmem [resolvable:$true] %s66_s16 }
  0x36   :  { %p1075_p11 = scmp.lt.u32.totalorder %s1071_s21, %s1285_s7 }
  0x38   :  { %p1077_p12 = pnand %p1075_p11, %p1072_p10 }
  0x3a   :  { %1080 = shalt.err (!%p1077_p12)
}
  0x3b   :  { %s1081_s25 = scalar_lea.vmem %s67_s16, 4096  ;;  %p1086_p0 = scmp.lt.s32.totalorder %s67_s16, %s67_s16 }
  0x3c   :  { %p1082_p13 = scmp.ne.s32.totalorder %s67_s16, %s1081_s25  ;;  %p1087_p1 = scmp.lt.s32.totalorder %s1081_s25, %s1081_s25 }
  0x3e   :  { %p1088_p2 = por %p1087_p1, %p1086_p0 }
  0x40   :  { %p1089_p3 = pnand %p1088_p2, %p1082_p13 }
  0x42   :  { %1092 = shalt.err (!%p1089_p3)
}
  0x43   :  { %72 = dma.hbm_to_vmem [thread:$0]  %s1285_s7, 4096, %s67_s16, [#allocation10], %s1126_s0, %s1126_s0, %s1127_s20  }
  0x44   :  { %1115 = dma.done.wait [#allocation4], 128  }
  0x45   :  { %1116 = vsyncadd [#allocation4], 4294967168 }
  0x46   :  { %1117 = dma.done.wait [#allocation7], 4160  }
  0x47   :  { %1118 = vsyncadd [#allocation7], 4294963136 }
  0x48   :  { %1119 = dma.done.wait [#allocation10], 4096  }
  0x49   :  { %1120 = vsyncadd [#allocation10], 4294963200  ;;  %v1129_v0 = vmov 0   ;;  %vm112_vm0 = vcmask 1041408   ;;  %vm172_vm1 = vcmask 1045504   ;;  %v96_v2 = vld [vmem:[%s1279_s1] sm:$0xff] }
  0x4a   :  { %151 = vmatprep.mubr.bf16.mxu0 %v1129_v0  ;;  %211 = vmatprep.mubr.bf16.mxu1 %v1129_v0  ;;  %v827_v1 = vld.sshfl [vmem:[#allocation6] sm:$0x33 pattern:$0x76325410]  ;;  %v92_v7 = vld [vmem:[#allocation3] sm:$0xff]  ;;  %v97_v8 = vpack.c.bf16 %v96_v2, %v96_v2  ;;  %vm108_vm2 = vcmask 31744  }
  0x4b   :  { %v107_v3 = vcombine.high %v827_v1, %v827_v1  ;;  %v906_v4 = vld [vmem:[%s1280_s2 + $0x4] ss:$8 sps:$4 sm:$0x3f]   ;;  %v114_v5 = vsel %vm112_vm0, %v827_v1, 0  ;;  %v911_v9 = vld [vmem:[#allocation8 + $0x4] ss:$8 sps:$4 sm:$0xff]   ;;  %v93_v11 = vpack.c.bf16 %v92_v7, %v92_v7  ;;  %v222_v7 = vlaneseq }
  0x4c   :  { %v908_v6 = vld [vmem:[%s1280_s2] ss:$8 sps:$4 sm:$0x3f]   ;;  %832 = vmatprep.subr.msk.bf16.mxu1 %vm172_vm1, %v906_v4  ;;  %v909_v12 = vld [vmem:[#allocation8] ss:$8 sps:$4 sm:$0xff]   ;;  %vm168_vm3 = vcmask 97280  }
  0x4d   :  { %828 = vmatprep.subr.msk.bf16.mxu0 %vm112_vm0, %v107_v3  ;;  %v174_v10 = vsel %vm172_vm1, %v908_v6, 0  ;;  %v914_v13 = vld [vmem:[#allocation8 + $0x14] ss:$8 sps:$4 sm:$0xff]   ;;  %v912_v14 = vld [vmem:[#allocation8 + $0x10] ss:$8 sps:$4 sm:$0xff]   ;;  %vm808_vm4 = vcmask 64512  }
  0x4e   :  { %120 = vmatpush1.bf16.msra.mxu0 %v114_v5  ;;  %180 = vmatpush1.bf16.msra.mxu1 %v174_v10  ;;  %v917_v15 = vld [vmem:[#allocation8 + $0x24] ss:$8 sps:$4 sm:$0xff]   ;;  %v915_v16 = vld [vmem:[#allocation8 + $0x20] ss:$8 sps:$4 sm:$0xff]   ;;  %v920_v17 = vld [vmem:[#allocation8 + $0x34] ss:$8 sps:$4 sm:$0xff]  }
  0x4f   :  { %442 = vmatprep.subr.bf16.mxu0 %v911_v9  ;;  %v918_v18 = vld [vmem:[#allocation8 + $0x30] ss:$8 sps:$4 sm:$0xff]   ;;  %v923_v19 = vld [vmem:[#allocation8 + $0x44] ss:$8 sps:$4 sm:$0xff]   ;;  %v921_v20 = vld [vmem:[#allocation8 + $0x40] ss:$8 sps:$4 sm:$0xff]  }
  0x50   :  { %v926_v21 = vld [vmem:[#allocation8 + $0x54] ss:$8 sps:$4 sm:$0xff]   ;;  %v924_v22 = vld [vmem:[#allocation8 + $0x50] ss:$8 sps:$4 sm:$0xff]   ;;  %v929_v23 = vld [vmem:[#allocation8 + $0x64] ss:$8 sps:$4 sm:$0xff]  }
  0x51   :  { %829 = vmatmul.mubr.msk.bf16.vlgmr.msra.gmra.mrb[0].mxu0 %vm108_vm2, %v97_v8  ;;  %833 = vmatmul.mubr.msk.bf16.vlgmr.msra.gmra.mrb[0].mxu1 %vm168_vm3, %v93_v11  ;;  %v927_v24 = vld [vmem:[#allocation8 + $0x60] ss:$8 sps:$4 sm:$0xff]   ;;  %v932_v25 = vld [vmem:[#allocation8 + $0x74] ss:$8 sps:$4 sm:$0xff]   ;;  %v930_v26 = vld [vmem:[#allocation8 + $0x70] ss:$8 sps:$4 sm:$0xff]  }
  0x52   :  { %443 = vmatpush1.bf16.msra.mxu0 %v909_v12  ;;  %v935_v27 = vld [vmem:[#allocation8 + $0x84] ss:$8 sps:$4 sm:$0xff]   ;;  %v933_v28 = vld [vmem:[#allocation8 + $0x80] ss:$8 sps:$4 sm:$0xff]   ;;  %v938_v29 = vld [vmem:[#allocation8 + $0x94] ss:$8 sps:$4 sm:$0xff]  }
  0x53   :  { %444 = vmatprep.subr.bf16.mxu0 %v914_v13  ;;  %v936_v30 = vld [vmem:[#allocation8 + $0x90] ss:$8 sps:$4 sm:$0xff]   ;;  %v941_v31 = vld [vmem:[#allocation8 + $0xa4] ss:$8 sps:$4 sm:$0xff]   ;;  %v939_v32 = vld [vmem:[#allocation8 + $0xa0] ss:$8 sps:$4 sm:$0xff]  }
  0x54   :  { %v944_v33 = vld [vmem:[#allocation8 + $0xb4] ss:$8 sps:$4 sm:$0xff]   ;;  %v942_v34 = vld [vmem:[#allocation8 + $0xb0] ss:$8 sps:$4 sm:$0xff]   ;;  %v947_v35 = vld [vmem:[#allocation8 + $0xc4] ss:$8 sps:$4 sm:$0xff]  }
  0x55   :  { %v945_v36 = vld [vmem:[#allocation8 + $0xc0] ss:$8 sps:$4 sm:$0xff]   ;;  %v950_v37 = vld [vmem:[#allocation8 + $0xd4] ss:$8 sps:$4 sm:$0xff]   ;;  %v948_v38 = vld [vmem:[#allocation8 + $0xd0] ss:$8 sps:$4 sm:$0xff]  }
  0x56   :  { %445 = vmatpush1.bf16.msra.mxu0 %v912_v14  ;;  %v953_v39 = vld [vmem:[#allocation8 + $0xe4] ss:$8 sps:$4 sm:$0xff]   ;;  %v951_v40 = vld [vmem:[#allocation8 + $0xe0] ss:$8 sps:$4 sm:$0xff]   ;;  %v956_v41 = vld [vmem:[#allocation8 + $0xf4] ss:$8 sps:$4 sm:$0xff]  }
  0x57   :  { %446 = vmatprep.subr.bf16.mxu0 %v917_v15  ;;  %v954_v42 = vld [vmem:[#allocation8 + $0xf0] ss:$8 sps:$4 sm:$0xff]   ;;  %v957_v43 = vld [vmem:[#allocation9] ss:$8 sps:$4 sm:$0xff]   ;;  %v959_v44 = vld [vmem:[#allocation9 + $0x4] ss:$8 sps:$4 sm:$0xff]  }
  0x58   :  { %v962_v45 = vld [vmem:[#allocation9 + $0x14] ss:$8 sps:$4 sm:$0xff]   ;;  %691 = vmatprep.subr.bf16.mxu1 %v959_v44  ;;  %v960_v46 = vld [vmem:[#allocation9 + $0x10] ss:$8 sps:$4 sm:$0xff]   ;;  %v965_v47 = vld [vmem:[#allocation9 + $0x24] ss:$8 sps:$4 sm:$0xff]  }
  0x59   :  { %692 = vmatpush1.bf16.msra.mxu1 %v957_v43  ;;  %v963_v48 = vld [vmem:[#allocation9 + $0x20] ss:$8 sps:$4 sm:$0xff]   ;;  %v968_v49 = vld [vmem:[#allocation9 + $0x34] ss:$8 sps:$4 sm:$0xff]   ;;  %v966_v50 = vld [vmem:[#allocation9 + $0x30] ss:$8 sps:$4 sm:$0xff]  }
  0x5a   :  { %447 = vmatpush1.bf16.msra.mxu0 %v915_v16  ;;  %693 = vmatprep.subr.bf16.mxu1 %v962_v45  ;;  %v971_v51 = vld [vmem:[#allocation9 + $0x44] ss:$8 sps:$4 sm:$0xff]   ;;  %v969_v52 = vld [vmem:[#allocation9 + $0x40] ss:$8 sps:$4 sm:$0xff]   ;;  %v974_v53 = vld [vmem:[#allocation9 + $0x54] ss:$8 sps:$4 sm:$0xff]  }
  0x5b   :  { %448 = vmatprep.subr.bf16.mxu0 %v920_v17  ;;  %v972_v54 = vld [vmem:[#allocation9 + $0x50] ss:$8 sps:$4 sm:$0xff]   ;;  %v977_v55 = vld [vmem:[#allocation9 + $0x64] ss:$8 sps:$4 sm:$0xff]   ;;  %v975_v56 = vld [vmem:[#allocation9 + $0x60] ss:$8 sps:$4 sm:$0xff]  }
  0x5c   :  { %v980_v57 = vld [vmem:[#allocation9 + $0x74] ss:$8 sps:$4 sm:$0xff]   ;;  %v978_v58 = vld [vmem:[#allocation9 + $0x70] ss:$8 sps:$4 sm:$0xff]   ;;  %v983_v59 = vld [vmem:[#allocation9 + $0x84] ss:$8 sps:$4 sm:$0xff]  }
  0x5d   :  { %694 = vmatpush1.bf16.msra.mxu1 %v960_v46  ;;  %v981_v60 = vld [vmem:[#allocation9 + $0x80] ss:$8 sps:$4 sm:$0xff]   ;;  %v986_v61 = vld [vmem:[#allocation9 + $0x94] ss:$8 sps:$4 sm:$0xff]   ;;  %v984_v62 = vld [vmem:[#allocation9 + $0x90] ss:$8 sps:$4 sm:$0xff]  }
  0x5e   :  { %449 = vmatpush1.bf16.msra.mxu0 %v918_v18  ;;  %695 = vmatprep.subr.bf16.mxu1 %v965_v47  ;;  %v989_v63 = vld [vmem:[#allocation9 + $0xa4] ss:$8 sps:$4 sm:$0xff]   ;;  %v987_v0 = vld [vmem:[#allocation9 + $0xa0] ss:$8 sps:$4 sm:$0xff]   ;;  %v992_v1 = vld [vmem:[#allocation9 + $0xb4] ss:$8 sps:$4 sm:$0xff]  }
  0x5f   :  { %450 = vmatprep.subr.bf16.mxu0 %v923_v19  ;;  %v990_v2 = vld [vmem:[#allocation9 + $0xb0] ss:$8 sps:$4 sm:$0xff]   ;;  %v995_v3 = vld [vmem:[#allocation9 + $0xc4] ss:$8 sps:$4 sm:$0xff]   ;;  %v993_v4 = vld [vmem:[#allocation9 + $0xc0] ss:$8 sps:$4 sm:$0xff]  }
  0x60   :  { %v998_v5 = vld [vmem:[#allocation9 + $0xd4] ss:$8 sps:$4 sm:$0xff]   ;;  %v996_v6 = vld [vmem:[#allocation9 + $0xd0] ss:$8 sps:$4 sm:$0xff]   ;;  %v223_v8 = vshrl.u32 %v222_v7, 7 }
  0x61   :  { %696 = vmatpush1.bf16.msra.mxu1 %v963_v48  ;;  %v220_v10 = vld [vmem:[%s1282_s4] sm:$0x3]  ;;  %v735_v47 = vld [vmem:[%s1287_s9 + $0x8] sm:$0xff] }
  0x62   :  { %451 = vmatpush1.bf16.msra.mxu0 %v921_v20  ;;  %697 = vmatprep.subr.bf16.mxu1 %v968_v49  ;;  %v224_v9 = vsub.s32 0, %v223_v8  ;;  %v228_v11 = vsub.s32 1, %v223_v8  ;;  %v519_v48 = vld [vmem:[%s1286_s8] sm:$0x3]  ;;  %s1130_s8 = smov [#allocation11]  }
  0x63   :  { %452 = vmatprep.subr.bf16.mxu0 %v926_v21  ;;  %s816_s19 = sshll.u32 %s1130_s8, 4  ;;  %s817_s19 = int_to_ptr.vmem [resolvable:$true] %s816_s19 }
  0x64   :  { %v225_v13 = vrot.slane %v220_v10, %v224_v9  ;;  %v229_v16 = vrot.slane %v220_v10, %v228_v11  ;;  %v524_v49 = vrot.slane %v519_v48, %v224_v9  ;;  %s1093_s21 = scalar_lea.vmem %s817_s19, 128  ;;  %p1098_p5 = scmp.lt.s32.totalorder %s817_s19, %s817_s19 }
  0x65   :  { %698 = vmatpush1.bf16.msra.mxu1 %v966_v50  ;;  %v528_v50 = vrot.slane %v519_v48, %v228_v11  ;;  %p1094_p4 = scmp.ne.s32.totalorder %s817_s19, %s1093_s21  ;;  %p1099_p6 = scmp.lt.s32.totalorder %s1093_s21, %s1093_s21 }
  0x66   :  { %453 = vmatpush1.bf16.msra.mxu0 %v924_v22  ;;  %699 = vmatprep.subr.bf16.mxu1 %v971_v51 }
  0x67   :  { %454 = vmatprep.subr.bf16.mxu0 %v929_v23  ;;  %p1100_p7 = por %p1099_p6, %p1098_p5 }
  0x69   :  { %700 = vmatpush1.bf16.msra.mxu1 %v969_v52  ;;  %p1101_p8 = pnand %p1100_p7, %p1094_p4 }
  0x6a   :  { %455 = vmatpush1.bf16.msra.mxu0 %v927_v24  ;;  %701 = vmatprep.subr.bf16.mxu1 %v974_v53 }
  0x6b   :  { %456 = vmatprep.subr.bf16.mxu0 %v932_v25 }
  0x6d   :  { %702 = vmatpush1.bf16.msra.mxu1 %v972_v54 }
  0x6e   :  { %457 = vmatpush1.bf16.msra.mxu0 %v930_v26  ;;  %703 = vmatprep.subr.bf16.mxu1 %v977_v55 }
  0x6f   :  { %458 = vmatprep.subr.bf16.mxu0 %v935_v27 }
  0x71   :  { %704 = vmatpush1.bf16.msra.mxu1 %v975_v56 }
  0x72   :  { %459 = vmatpush1.bf16.msra.mxu0 %v933_v28  ;;  %705 = vmatprep.subr.bf16.mxu1 %v980_v57 }
  0x73   :  { %460 = vmatprep.subr.bf16.mxu0 %v938_v29 }
  0x75   :  { %706 = vmatpush1.bf16.msra.mxu1 %v978_v58 }
  0x76   :  { %461 = vmatpush1.bf16.msra.mxu0 %v936_v30  ;;  %707 = vmatprep.subr.bf16.mxu1 %v983_v59  ;;  %v1001_v30 = vld [vmem:[#allocation9 + $0xe4] ss:$8 sps:$4 sm:$0xff]   ;;  %v734_v59 = vld [vmem:[%s1287_s9] sm:$0xff] }
  0x77   :  { %462 = vmatprep.subr.bf16.mxu0 %v941_v31  ;;  %v999_v31 = vld [vmem:[#allocation9 + $0xe0] ss:$8 sps:$4 sm:$0xff]  }
  0x79   :  { %708 = vmatpush1.bf16.msra.mxu1 %v981_v60  ;;  %v737_v60 = vstv %s1288_s10 }
  0x7a   :  { %463 = vmatpush1.bf16.msra.mxu0 %v939_v32  ;;  %709 = vmatprep.subr.bf16.mxu1 %v986_v61  ;;  %v1004_v32 = vld [vmem:[#allocation9 + $0xf4] ss:$8 sps:$4 sm:$0xff]  }
  0x7b   :  { %464 = vmatprep.subr.bf16.mxu0 %v944_v33  ;;  %v1002_v33 = vld [vmem:[#allocation9 + $0xf0] ss:$8 sps:$4 sm:$0xff]  }
  0x7d   :  { %710 = vmatpush1.bf16.msra.mxu1 %v984_v62 }
  0x7e   :  { %465 = vmatpush1.bf16.msra.mxu0 %v942_v34  ;;  %711 = vmatprep.subr.bf16.mxu1 %v989_v63  ;;  %v270_v34 = vld [vmem:[%s1284_s6] sm:$0x3] }
  0x7f   :  { %466 = vmatprep.subr.bf16.mxu0 %v947_v35  ;;  %v275_v35 = vrot.slane %v270_v34, %v224_v9 }
  0x81   :  { %712 = vmatpush1.bf16.msra.mxu1 %v987_v0 }
  0x82   :  { %467 = vmatpush1.bf16.msra.mxu0 %v945_v36  ;;  %713 = vmatprep.subr.bf16.mxu1 %v992_v1  ;;  %v279_v36 = vrot.slane %v270_v34, %v228_v11 }
  0x83   :  { %468 = vmatprep.subr.bf16.mxu0 %v950_v37 }
  0x85   :  { %714 = vmatpush1.bf16.msra.mxu1 %v990_v2 }
  0x86   :  { %469 = vmatpush1.bf16.msra.mxu0 %v948_v38  ;;  %715 = vmatprep.subr.bf16.mxu1 %v995_v3 }
  0x87   :  { %470 = vmatprep.subr.bf16.mxu0 %v953_v39 }
  0x89   :  { %716 = vmatpush1.bf16.msra.mxu1 %v993_v4 }
  0x8a   :  { %471 = vmatpush1.bf16.msra.mxu0 %v951_v40  ;;  %717 = vmatprep.subr.bf16.mxu1 %v998_v5 }
  0x8b   :  { %472 = vmatprep.subr.bf16.mxu0 %v956_v41 }
  0x8d   :  { %718 = vmatpush1.bf16.msra.mxu1 %v996_v6 }
  0x8e   :  { %473 = vmatpush1.bf16.msra.mxu0 %v954_v42  ;;  %719 = vmatprep.subr.bf16.mxu1 %v1001_v30 }
  0x91   :  { %720 = vmatpush1.bf16.msra.mxu1 %v999_v31 }
  0x92   :  { %721 = vmatprep.subr.bf16.mxu1 %v1004_v32 }
  0x95   :  { %722 = vmatpush1.bf16.msra.mxu1 %v1002_v33 }
 0x124   :  { %v153_v12 = vpop.f32.mrb[0].mxu0  ;;  %v213_v14 = vpop.f32.mrb[0].mxu1 }
 0x125   :  { %v155_v15 = vpop.f32.mrb[1].mxu0  ;;  %v214_v17 = vadd.f32 %v213_v14, %v153_v12  ;;  %v215_v18 = vpop.f32.mrb[1].mxu1 }
 0x126   :  { %v157_v19 = vpop.f32.mrb[2].mxu0  ;;  %v216_v20 = vadd.f32 %v215_v18, %v155_v15  ;;  %v217_v21 = vpop.f32.mrb[2].mxu1 }
 0x127   :  { %v158_v22 = vpop.f32.mrb[3].mxu0  ;;  %v232_v23 = vadd.f32 %v225_v13, %v214_v17  ;;  %v218_v24 = vpop.f32.mrb[3].mxu1 }
 0x128   :  { %v233_v25 = vadd.f32 %v229_v16, %v216_v20 }
 0x129   :  { %v234_v26 = vmax.f32 %v232_v23, 0.0 }
 0x12a   :  { %v235_v27 = vmax.f32 %v233_v25, 0.0 }
 0x12b   :  { %v236_v29 = vpack.c.bf16 %v234_v26, %v234_v26 }
 0x12c   :  { %v237_v28 = vpack.c.bf16 %v235_v27, %v235_v27 }
 0x12e   :  { %474 = vmatprep.mubr.bf16.mxu0 %v237_v28 }
 0x12f   :  { %475 = vmatmul.mubr.bf16.vlgmr.msra.gmra.mrb[4].mxu0 %v236_v29 }
 0x130   :  { %802 = vmatprep.mubr.f32.mxu0 %v735_v47 }
 0x202   :  { %v476_v37 = vpop.f32.mrb[4].mxu0 }
 0x203   :  { %v477_v38 = vadd.f32 %v476_v37, %v275_v35  ;;  %v478_v39 = vpop.f32.mrb[5].mxu0 }
 0x204   :  { %v479_v40 = vadd.f32 %v478_v39, %v279_v36  ;;  %v480_v41 = vpop.f32.mrb[6].mxu0 }
 0x205   :  { %v483_v42 = vmax.f32 %v477_v38, 0.0  ;;  %v481_v43 = vpop.f32.mrb[7].mxu0 }
 0x206   :  { %v484_v44 = vmax.f32 %v479_v40, 0.0 }
 0x207   :  { %v485_v46 = vpack.c.bf16 %v483_v42, %v483_v42 }
 0x208   :  { %v486_v45 = vpack.c.bf16 %v484_v44, %v484_v44 }
 0x20a   :  { %723 = vmatprep.mubr.bf16.mxu1 %v486_v45 }
 0x20b   :  { %724 = vmatmul.mubr.bf16.vlgmr.msra.gmra.mrb[4].mxu1 %v485_v46 }
 0x2de   :  { %v725_v51 = vpop.f32.mrb[4].mxu1 }
 0x2df   :  { %v726_v52 = vadd.f32 %v725_v51, %v524_v49  ;;  %v727_v53 = vpop.f32.mrb[5].mxu1 }
 0x2e0   :  { %v728_v54 = vadd.f32 %v727_v53, %v528_v50  ;;  %v729_v55 = vpop.f32.mrb[6].mxu1 }
 0x2e1   :  { %v730_v56 = vpop.f32.mrb[7].mxu1  ;;  %v732_v58 = vmax.f32 %v726_v52, 0.0 }
 0x2e2   :  { %v733_v57 = vmax.f32 %v728_v54, 0.0 }
 0x2e4   :  { %738 = vmatprep.subr.mxu0 %v733_v57 }
 0x2e5   :  { %739 = vmatpush1.xpose.msra.mxu0 %v732_v58 }
 0x2e8   :  { %803 = vmatmul.mubr.f32.vlgmr.msra.gmra.mrb[8].mxu0 %v734_v59 }
 0x3bb   :  { %v804_v61 = vpop.f32.mrb[8].mxu0 }
 0x3bc   :  { %v805_v62 = vadd.f32 %v804_v61, %v737_v60  ;;  %v806_v63 = vpop.f32.mrb[9].mxu0 }
 0x3be   :  { %809 = vst.msk [vmem:[#allocation11] sm:$0xff] %vm808_vm4, %v805_v62 }
 0x3bf   :  { %1104 = shalt.err (!%p1101_p8)
}
 0x3c0   :  { %s1105_s18 = scalar_lea.hbm %s1289_s11, 128 }
 0x3c1   :  { %p1106_p9 = scmp.ne.s32.totalorder %s1289_s11, %s1105_s18  ;;  %p1109_p10 = scmp.lt.u32.totalorder %s1105_s18, %s1289_s11 }
 0x3c3   :  { %p1111_p11 = pnand %p1109_p10, %p1106_p9 }
 0x3c5   :  { %1114 = shalt.err (!%p1111_p11)
}
 0x3c6   :  { %819 = dma.vmem_to_hbm [thread:$0]  %s817_s19, 128, %s1289_s11, [#allocation5]  }
 0x3c7   :  { %1121 = dma.done.wait [#allocation5], 128  }
 0x3c8   :  { %1122 = vsyncadd [#allocation5], 4294967168 }
 0x3c9   :  { %823 = vsyncpa [#allocation4], 1 }
 0x3ca   :  { %824 = vsyncpa [#allocation7], 1 }
 0x3cb   :  { %825 = vsyncpa [#allocation10], 1 }
 0x3cc   :  { %826 = vsyncpa [#allocation5], 1 }

</bundles_post_ra>
